<compile_context>
chip_gen: v7x
topology: tpu7x:2x2x1
jax: 0.10.0
libtpu: 0.0.40
codegen_flags: <defaults>
</compile_context>

<pallas_src>
import functools

import jax
import jax.numpy as jnp
from jax.experimental import pallas as pl
from jax.experimental.pallas import tpu as pltpu

_LANE = 128


def _round_up(x, m):
    return (x + m - 1) // m * m


def head_kernel(x_ref, w_ref, o_ref, *, head_size, head_pad, mxu_dtype):
    H, Hp = head_size, head_pad
    x = x_ref[...]                         # (Bblk, T, C), input dtype
    w = w_ref[...]                         # (C, 3*Hp), mxu dtype; Wq columns pre-scaled
    Bblk, T, C = x.shape

    # Fused QKV projection: one (Bblk*T, C) x (C, 3*Hp) MXU matmul,
    # bf16 operands / f32 accumulation.
    qkv = jnp.dot(x.reshape(Bblk * T, C).astype(mxu_dtype), w,
                  preferred_element_type=jnp.float32)           # (Bblk*T, 3*Hp) f32
    qkv = qkv.reshape(Bblk, T, 3 * Hp)

    # Lane-aligned (multiple-of-128) splits: no lane-shift relayout.  Padded columns
    # are exactly zero, so using the padded q/k/v below is exact.
    q = qkv[:, :, 0 * Hp:1 * Hp]           # already scaled by head_size**-0.5
    k = qkv[:, :, 1 * Hp:2 * Hp]
    v = qkv[:, :, 2 * Hp:3 * Hp]

    # Scores: contract the (padded) head dim of q and k directly (no k.T / XLU
    # transpose); bf16 MXU operands, f32 accumulation.
    s = jnp.einsum("btd,bsd->bts",
                   q.astype(mxu_dtype), k.astype(mxu_dtype),
                   preferred_element_type=jnp.float32)          # (Bblk, T, T) f32

    # Causal mask.  Finite mask value instead of -inf so a hypothetical fully-masked
    # row degrades to a uniform distribution rather than NaN (the causal diagonal is
    # always unmasked, so results are identical to the -inf formulation).
    row = jax.lax.broadcasted_iota(jnp.int32, (T, T), 0)
    col = jax.lax.broadcasted_iota(jnp.int32, (T, T), 1)
    mask_val = jnp.float32(jnp.finfo(jnp.float32).min)
    s = jnp.where((row >= col)[None, :, :], s, mask_val)

    # Numerically stable softmax (f32).  The per-row reciprocal goes to the otherwise
    # idle EUP slot (approx=True), then a cheap O(T^2) multiply.
    s = s - jnp.max(s, axis=-1, keepdims=True)
    p = jnp.exp(s)
    inv = pl.reciprocal(jnp.sum(p, axis=-1, keepdims=True), approx=True)
    p = p * inv

    # TODO(synk): nn.Dropout(0.2) on the attention probabilities is identity in eval
    # mode; training-mode torch RNG cannot be reproduced bitwise, so it is omitted.

    # P @ V, bf16 MXU operands / f32 accumulation.  Only the first H output columns
    # are meaningful (the rest come from the zero-padded value weights).
    out = jnp.einsum("bts,bsd->btd",
                     p.astype(mxu_dtype), v.astype(mxu_dtype),
                     preferred_element_type=jnp.float32)        # (Bblk, T, Hp) f32

    o_ref[...] = out[:, :, :H].astype(o_ref.dtype)


def _vmem_bytes_estimate(bblk, T, C, H, Hp, in_itemsize, mxu_itemsize):
    """Rough per-grid-step VMEM footprint used to size batch_block."""
    x_io = 2 * bblk * T * C * in_itemsize           # double-buffered input block
    out_io = 2 * bblk * T * H * in_itemsize         # double-buffered output block
    w_res = 2 * C * 3 * Hp * mxu_itemsize           # resident fused weight
    qkv = bblk * T * 3 * Hp * 4                     # f32 projection result
    scores = 2 * bblk * T * T * 4                   # s and p (f32) -- dominant term
    pv = bblk * T * Hp * 4                          # f32 output accumulator
    casts = (bblk * T * C + 2 * bblk * T * Hp + bblk * T * T) * mxu_itemsize
    return x_io + out_io + w_res + qkv + scores + pv + casts


def head_forward(x, w_key, w_query, w_value, *, batch_block=None,
                 vmem_budget_bytes=20 * 1024 * 1024):
    """x: (B, T, C); w_*: PyTorch-style nn.Linear weights of shape (H, C)."""
    B, T, C = x.shape
    H = w_key.shape[0]
    scale = float(H) ** -0.5

    # MXU operands: bf16 for f32 inputs (f32 matmuls cost ~3x the bf16 vmatmul work);
    # all accumulation and softmax math stays f32 inside the kernel.
    mxu_dtype = jnp.bfloat16 if x.dtype == jnp.float32 else x.dtype

    # Pad each projection's output columns to a 128-lane boundary so the in-kernel
    # q/k/v splits fall on vreg boundaries.  Extra MXU columns are essentially free.
    Hp = _round_up(H, _LANE)

    def pad_cols(w2d):                               # (C, H) -> (C, Hp)
        return jnp.pad(w2d, ((0, 0), (0, Hp - H)))

    # Fuse [Wq*scale | Wk | Wv] (each padded) into one (C, 3*Hp) matrix; the softmax
    # scale is folded into the query weights.
    w_qkv = jnp.concatenate(
        [pad_cols((w_query * scale).T), pad_cols(w_key.T), pad_cols(w_value.T)],
        axis=1).astype(mxu_dtype)                    # (C, 3*Hp)

    if batch_block is None:
        in_itemsize = jnp.dtype(x.dtype).itemsize
        mxu_itemsize = jnp.dtype(mxu_dtype).itemsize
        # Keep >= 2 grid steps (when B >= 2) so the "parallel" batch axis can shard
        # across v7x's two TensorCores; grow the block as far as the VMEM budget
        # allows (fewer, fatter steps amortize the ~0.35-0.6 us/step pipeline cost).
        cap = max(1, B // 2)
        batch_block = 1
        for d in range(1, B + 1):
            if (B % d == 0 and d <= cap and
                    _vmem_bytes_estimate(d, T, C, H, Hp, in_itemsize,
                                         mxu_itemsize) <= vmem_budget_bytes):
                batch_block = d
        # TODO(synk): for prime / awkward B this degrades toward batch_block=1; pad B
        # (or use pl.cdiv + masking) if such batch sizes occur in practice.
    assert B % batch_block == 0, "batch_block must divide B"
    grid = (B // batch_block,)

    # Explicit scoped-VMEM limit: above v5e's 16 MiB default, comfortably below
    # v7x's 64 MiB physical capacity.
    vmem_limit_bytes = min(2 * vmem_budget_bytes, 48 * 1024 * 1024)

    kernel = functools.partial(head_kernel, head_size=H, head_pad=Hp,
                               mxu_dtype=mxu_dtype)
    return pl.pallas_call(
        kernel,
        out_shape=jax.ShapeDtypeStruct((B, T, H), x.dtype),
        grid=grid,
        in_specs=[
            pl.BlockSpec((batch_block, T, C), lambda b: (b, 0, 0)),
            pl.BlockSpec((C, 3 * Hp), lambda b: (0, 0)),   # constant block -> stays resident
        ],
        out_specs=pl.BlockSpec((batch_block, T, H), lambda b: (b, 0, 0)),
        compiler_params=pltpu.CompilerParams(
            dimension_semantics=("parallel",),
            vmem_limit_bytes=vmem_limit_bytes,
        ),
    )(x, w_qkv)


def reference_head(x, w_key, w_query, w_value):
    """Pure-JAX (f32) reference of the PyTorch forward (eval mode)."""
    B, T, C = x.shape
    H = w_key.shape[0]
    k = x @ w_key.T
    q = x @ w_query.T
    v = x @ w_value.T
    wei = (q @ jnp.swapaxes(k, -2, -1)) * (H ** -0.5)
    mask = jnp.tril(jnp.ones((T, T), dtype=bool))
    wei = jnp.where(mask, wei, -jnp.inf)
    wei = jax.nn.softmax(wei, axis=-1)
    return wei @ v


if __name__ == "__main__":
    # Small, TPU-friendly shapes consistent with the module's forward:
    # B=4 batch, T=16 positions (<= block_size=128), C=32 embedding, head_size=16.
    B, T, C, H = 4, 16, 32, 16

    key = jax.random.PRNGKey(0)
    kx, kk, kq, kv = jax.random.split(key, 4)

    x = jax.random.normal(kx, (B, T, C), dtype=jnp.float32)

    # Deterministic init matching nn.Linear(n_embd, head_size, bias=False):
    # weight shape (head_size, n_embd), uniform(-1/sqrt(in), 1/sqrt(in)).
    bound = 1.0 / (C ** 0.5)
    w_key = jax.random.uniform(kk, (H, C), jnp.float32, -bound, bound)
    w_query = jax.random.uniform(kq, (H, C), jnp.float32, -bound, bound)
    w_value = jax.random.uniform(kv, (H, C), jnp.float32, -bound, bound)

    out = head_forward(x, w_key, w_query, w_value)
    out = jax.block_until_ready(out)

    ref = reference_head(x, w_key, w_query, w_value)
    assert out.shape == (B, T, H)
    # Tolerance accounts for bf16 MXU operands (f32 accumulation) and the EUP
    # approximate reciprocal; errors are ~1e-3 at these magnitudes.
    assert jnp.allclose(out, ref, atol=2e-2, rtol=2e-2), "mismatch vs reference"

    print("KERNEL_OK")
</pallas_src>

<mosaic_0001>
module attributes {stable_mosaic.version = 11 : i64} {
  func.func @head_kernel(%arg0: i32, %arg1: memref<2x16x32xf32, #tpu.memory_space<vmem>>, %arg2: memref<32x384xbf16, #tpu.memory_space<vmem>>, %arg3: memref<2x16x16xf32, #tpu.memory_space<vmem>>) attributes {dimension_semantics = [#tpu.dimension_semantics<parallel>], iteration_bounds = array<i64: 2>, scalar_prefetch = 0 : i64, scratch_operands = 0 : i64, tpu.core_type = #tpu.core_type<tc>, window_params = [{transform_indices = @transform_0, window_bounds = array<i64: 2, 16, 32>}, {pipeline_mode = #tpu.pipeline_mode<synchronous>, transform_indices = @transform_1, window_bounds = array<i64: 32, 384>}, {transform_indices = @transform_2, window_bounds = array<i64: 2, 16, 16>}]} {
    %c0 = arith.constant 0 : index
    %c0_0 = arith.constant 0 : index
    %c0_1 = arith.constant 0 : index
    %0 = vector.load %arg1[%c0, %c0_0, %c0_1] : memref<2x16x32xf32, #tpu.memory_space<vmem>>, vector<2x16x32xf32>
    %c0_2 = arith.constant 0 : index
    %c0_3 = arith.constant 0 : index
    %1 = vector.load %arg2[%c0_2, %c0_3] : memref<32x384xbf16, #tpu.memory_space<vmem>>, vector<32x384xbf16>
    %2 = vector.shape_cast %0 : vector<2x16x32xf32> to vector<32x32xf32>
    %3 = arith.truncf %2 : vector<32x32xf32> to vector<32x32xbf16>
    %cst = arith.constant dense<0.000000e+00> : vector<32x384xf32>
    %4 = tpu.matmul %3, %1, %cst {dimension_numbers = #tpu.dot_dimension_numbers<[1], [0], [0], [1], [0, 0, 1, 1], [], []>} : vector<32x32xbf16>, vector<32x384xbf16>, vector<32x384xf32> -> vector<32x384xf32>
    %5 = vector.shape_cast %4 : vector<32x384xf32> to vector<2x16x384xf32>
    %6 = vector.extract_strided_slice %5 {offsets = [0, 0, 0], sizes = [2, 16, 128], strides = [1, 1, 1]} : vector<2x16x384xf32> to vector<2x16x128xf32>
    %7 = vector.extract_strided_slice %5 {offsets = [0, 0, 128], sizes = [2, 16, 128], strides = [1, 1, 1]} : vector<2x16x384xf32> to vector<2x16x128xf32>
    %8 = vector.extract_strided_slice %5 {offsets = [0, 0, 256], sizes = [2, 16, 128], strides = [1, 1, 1]} : vector<2x16x384xf32> to vector<2x16x128xf32>
    %9 = arith.truncf %6 : vector<2x16x128xf32> to vector<2x16x128xbf16>
    %10 = arith.truncf %7 : vector<2x16x128xf32> to vector<2x16x128xbf16>
    "tpu.trace_start"() <{level = 10 : i32, message = "btd,bsd->bts"}> : () -> ()
    %cst_4 = arith.constant dense<0.000000e+00> : vector<2x16x16xf32>
    %11 = tpu.matmul %9, %10, %cst_4 {dimension_numbers = #tpu.dot_dimension_numbers<[2], [2], [1], [1], [0, 0, 0, 1, 1, 1], [0], [0]>} : vector<2x16x128xbf16>, vector<2x16x128xbf16>, vector<2x16x16xf32> -> vector<2x16x16xf32>
    "tpu.trace_stop"() : () -> ()
    %12 = tpu.iota {dimensions = array<i32: 0>} : vector<16x16xi32>
    %13 = tpu.iota {dimensions = array<i32: 1>} : vector<16x16xi32>
    %14 = arith.cmpi sge, %12, %13 : vector<16x16xi32>
    %15 = vector.shape_cast %14 : vector<16x16xi1> to vector<1x16x16xi1>
    %cst_5 = arith.constant -3.40282347E+38 : f32
    %16 = vector.shape_cast %15 : vector<1x16x16xi1> to vector<1x16x16xi1>
    %17 = vector.broadcast %16 : vector<1x16x16xi1> to vector<2x16x16xi1>
    %18 = vector.broadcast %cst_5 : f32 to vector<2x16x16xf32>
    %19 = arith.select %17, %11, %18 : vector<2x16x16xi1>, vector<2x16x16xf32>
    %cst_6 = arith.constant dense<0xFF800000> : vector<2x16xf32>
    %20 = vector.multi_reduction <maximumf>, %19, %cst_6 [2] : vector<2x16x16xf32> to vector<2x16xf32>
    %21 = vector.shape_cast %20 : vector<2x16xf32> to vector<2x16x1xf32>
    %22 = vector.broadcast %21 : vector<2x16x1xf32> to vector<2x16x16xf32>
    %23 = arith.subf %19, %22 : vector<2x16x16xf32>
    %24 = math.exp %23 : vector<2x16x16xf32>
    %cst_7 = arith.constant dense<0.000000e+00> : vector<2x16xf32>
    %25 = vector.multi_reduction <add>, %24, %cst_7 [2] : vector<2x16x16xf32> to vector<2x16xf32>
    %26 = vector.shape_cast %25 : vector<2x16xf32> to vector<2x16x1xf32>
    %27 = tpu.reciprocal %26 {approx = true} : vector<2x16x1xf32> -> vector<2x16x1xf32>
    %28 = vector.broadcast %27 : vector<2x16x1xf32> to vector<2x16x16xf32>
    %29 = arith.mulf %24, %28 : vector<2x16x16xf32>
    %30 = arith.truncf %29 : vector<2x16x16xf32> to vector<2x16x16xbf16>
    %31 = arith.truncf %8 : vector<2x16x128xf32> to vector<2x16x128xbf16>
    "tpu.trace_start"() <{level = 10 : i32, message = "bts,bsd->btd"}> : () -> ()
    %cst_8 = arith.constant dense<0.000000e+00> : vector<2x16x128xf32>
    %32 = tpu.matmul %30, %31, %cst_8 {dimension_numbers = #tpu.dot_dimension_numbers<[2], [1], [1], [2], [0, 0, 0, 1, 1, 2], [0], [0]>} : vector<2x16x16xbf16>, vector<2x16x128xbf16>, vector<2x16x128xf32> -> vector<2x16x128xf32>
    "tpu.trace_stop"() : () -> ()
    %33 = vector.extract_strided_slice %32 {offsets = [0, 0, 0], sizes = [2, 16, 16], strides = [1, 1, 1]} : vector<2x16x128xf32> to vector<2x16x16xf32>
    %c0_9 = arith.constant 0 : index
    %c0_10 = arith.constant 0 : index
    %c0_11 = arith.constant 0 : index
    %34 = vector.load %arg3[%c0_9, %c0_10, %c0_11] : memref<2x16x16xf32, #tpu.memory_space<vmem>>, vector<2x16x16xf32>
    tpu.vector_store %arg3[%c0_9, %c0_10, %c0_11], %33 {strides = array<i32>} : memref<2x16x16xf32, #tpu.memory_space<vmem>>, vector<2x16x16xf32>,
    return
  }
  func.func @transform_0(%arg0: i32) -> (i32, i32, i32) {
    %c0_i32 = arith.constant 0 : i32
    %c0_i32_0 = arith.constant 0 : i32
    %c0_i32_1 = arith.constant 0 : i32
    return %arg0, %c0_i32, %c0_i32_0 : i32, i32, i32
  }
  func.func @transform_1(%arg0: i32) -> (i32, i32) {
    %c0_i32 = arith.constant 0 : i32
    %c0_i32_0 = arith.constant 0 : i32
    %c0_i32_1 = arith.constant 0 : i32
    return %c0_i32, %c0_i32_0 : i32, i32
  }
  func.func @transform_2(%arg0: i32) -> (i32, i32, i32) {
    %c0_i32 = arith.constant 0 : i32
    %c0_i32_0 = arith.constant 0 : i32
    %c0_i32_1 = arith.constant 0 : i32
    return %arg0, %c0_i32, %c0_i32_0 : i32, i32, i32
  }
}

</mosaic_0001>

<bundles_post_ra>
// kernel: tpu_custom_call.1
= control target key start
LH: loop header
LB: loop body
LE: loop exit
PB: predicated region body
PF: predicated region fallthrough
CT: control target
= control target key end

     0   :  { %7 = vsyncpa [#allocation3], 0  ;;  %s1228_s0 = inlined_call_operand.hbm [shape: f32[4,16,32], index: 0, kind: input, shape index: {}]   ;;  %s1229_s1 = inlined_call_operand.hbm [shape: bf16[32,384], index: 1, kind: input, shape index: {}]   ;;  %s1230_s2 = inlined_call_operand.hbm [shape: f32[4,16,16], index: 2, kind: output, shape index: {}]  }
   0x1   :  { %9 = vsyncpa [#allocation3 + $0x1], 0 }
   0x2   :  { %10 = vsyncpa [#allocation6], 0 }
   0x3   :  { %11 = vsyncpa [#allocation4], 0 }
   0x4   :  { %13 = vsyncpa [#allocation4 + $0x1], 0  ;;  %s1001_s9 = smov 0   ;;  %s1003_s10 = smov 0  }
   0x5   :  { %s1005_s11 = smov 0   ;;  %s1007_s12 = smov 0  }
   0x6 LB: > { %s1022_s13 = sadd.s32 4294967295, %s972_s12   ;;  %s676_s14 = sadd.s32 4294967294, %s972_s12   ;;  %s972_s12 = sphi %s1007_s12, %s1250_s12   ;;  %s968_s11 = sphi %s1005_s11, %s1249_s11   ;;  %s964_s10 = sphi %s1003_s10, %s1248_s10   ;;  %s960_s9 = sphi %s1001_s9, %s1247_s9  }
   0x7   : > { %p39_p0 = scmp.ne.s32.totalorder %s964_s10, %s960_s9  ;;  %p1231_p1 = scmp.eq.s32.totalorder %s1022_s13, 0 }
   0x8   : > { %p90_p3 = scmp.eq.s32.totalorder %s676_s14, 1  ;;  %p677_p5 = scmp.ge.s32.totalorder %s972_s12, 1 }
   0x9   : > { %p1031_p4 = por %p1231_p1, %p39_p0  ;;  %p97_p7 = scmp.lt.s32.totalorder %s972_s12, 3 }
   0xa   : > { %p1036_p6 = por %p90_p3, %p39_p0  ;;  %s974_s18 = smov [#allocation5]  }
   0xb   : > { %s1234_s15 = scalar_select %p1031_p4, 1, 0 }
   0xc   : > { %s1235_s16 = scalar_select %p1036_p6, 1, 0 }
   0xd   : > { %p1041_p8 = pnand %p677_p5, %p97_p7  ;;  %s109_s19 = sshll.u32 %s974_s18, 4  ;;  %s1045_s19 = int_to_ptr.vmem [resolvable:$true] %s109_s19 }
   0xe   : > { %s1057_s21 = sadd.s32 1, %s972_s12   ;;  %s26_s22 = sadd.s32 1, %s968_s11 }
   0xf   : > { %s1236_s17 = scalar_select %p1041_p8, 1, 0 }
  0x10   : > { %p762_p9 = pneg %p1041_p8  ;;  %s23_s23 = ssub.s32 %s972_s12, %s1057_s21 }
  0x11   : > { %s844_s26 = scalar_lea.hbm %s1229_s1, 768 }
  0x12   : > { %p1052_p11 = pnand %p762_p9, %p1231_p1  ;;  %p845_p12 = scmp.ne.s32.totalorder %s1229_s1, %s844_s26 }
  0x13   : > { %p851_p5 = scmp.lt.u32.totalorder %s844_s26, %s1229_s1 }
  0x14   : > { %p846_p13 = pneg %p1052_p11 }
  0x16   : > { %p847_p0 = pnand %p846_p13, %p845_p12 }
  0x18   : > { %p848_p3 = pneg %p847_p0 }
  0x1a   : > { %p853_p7 = pnand %p851_p5, %p848_p3 }
  0x1c   : > { %856 = shalt.err (!%p853_p7)
}
  0x1d   : > { %s857_s3 = scalar_lea.vmem %s1045_s19, 768  ;;  %p865_p2 = scmp.lt.s32.totalorder %s1045_s19, %s1045_s19 }
  0x1e   : > { %p858_p9 = scmp.ne.s32.totalorder %s1045_s19, %s857_s3  ;;  %p866_p6 = scmp.lt.s32.totalorder %s857_s3, %s857_s3 }
  0x20   : > { %p860_p10 = pnand %p858_p9, %p846_p13  ;;  %p867_p4 = por %p866_p6, %p865_p2 }
  0x22   : > { %p861_p1 = pneg %p860_p10 }
  0x24   : > { %p868_p8 = pnand %p867_p4, %p861_p1 }
  0x26   : > { %871 = shalt.err (!%p868_p8)
}
  0x27   : > { %s975_s4 = smov 192   ;;  %s976_s5 = smov 12  }
  0x28   : > { %765 = dma.hbm_to_vmem [thread:$0]  (!%p1052_p11), %s1229_s1, 768, %s1045_s19, [#allocation6], %s975_s4, %s975_s4, %s976_s5  }
  0x29   : > { %p24_p2 = scmp.eq.s32.totalorder %s23_s23, 0  ;;  %p33_p1 = scmp.ne.s32.totalorder %s968_s11, %s964_s10 }
  0x2a   : > { %p34_p4 = scmp.eq.s32.totalorder %s972_s12, 0  ;;  %p775_p6 = scmp.lt.s32.totalorder %s972_s12, 2 }
  0x2b   : > { %s1088_s8 = scalar_select %p24_p2, %s968_s11, %s26_s22  }
  0x2c   : > { %p35_p8 = por %p34_p4, %p33_p1  ;;  %p1238_p10 = scmp.eq.s32.totalorder %s1022_s13, 1 }
  0x2d   : > { %s123_s18 = sand.u32 1, %s968_s11   ;;  %s707_s24 = sshll.u32 %s972_s12, 9 }
  0x2e   : > { %p1092_p12 = por %p1238_p10, %p33_p1  ;;  %s680_s25 = sshll.u32 %s123_s18, 5 }
  0x2f   : > { %s1101_s27 = scalar_lea.hbm %s1228_s0, %s707_s24  ;;  %s127_s19 = scalar_lea.vmem [#allocation2], %s680_s25 }
  0x30   : > { %s135_s22 = sshll.u32 %s127_s19, 4  ;;  %p1103_p11 = pnand %p775_p6, %p35_p8  ;;  %s1107_s22 = int_to_ptr.vmem [resolvable:$true] %s135_s22 }
  0x31   : > { %s1109_s28 = scalar_lea.sflag [#allocation3], %s123_s18  ;;  %s872_s29 = scalar_lea.hbm %s1101_s27, 512 }
  0x32   : > { %p873_p13 = scmp.ne.s32.totalorder %s1101_s27, %s872_s29  ;;  %p874_p0 = pneg %p1103_p11 }
  0x33   : > { %s877_s4 = scalar_lea.hbm %s1228_s0, 1024  ;;  %p878_p7 = scmp.lt.u32.totalorder %s1101_s27, %s1228_s0 }
  0x34   : > { %p875_p3 = pnand %p874_p0, %p873_p13  ;;  %p879_p9 = scmp.lt.u32.totalorder %s877_s4, %s872_s29 }
  0x35   : > { %p881_p1 = scmp.lt.u32.totalorder %s872_s29, %s1101_s27 }
  0x36   : > { %p876_p5 = pneg %p875_p3  ;;  %p880_p2 = por %p879_p9, %p878_p7 }
  0x38   : > { %p882_p4 = por %p881_p1, %p880_p2 }
  0x3a   : > { %p883_p6 = pnand %p882_p4, %p876_p5 }
  0x3c   : > { %886 = shalt.err (!%p883_p6)
}
  0x3d   : > { %s887_s7 = scalar_lea.vmem %s1107_s22, 512  ;;  %s977_s18 = smov [#allocation2]  }
  0x3e   : > { %p888_p8 = scmp.ne.s32.totalorder %s1107_s22, %s887_s7  ;;  %s892_s24 = sshll.u32 %s977_s18, 4  ;;  %s893_s24 = int_to_ptr.vmem [resolvable:$false] %s892_s24 }
  0x3f   : > { %s894_s25 = scalar_lea.vmem %s893_s24, 1024  ;;  %p895_p3 = scmp.lt.s32.totalorder %s1107_s22, %s893_s24 }
  0x40   : > { %p890_p10 = pnand %p888_p8, %p874_p0  ;;  %p896_p7 = scmp.lt.s32.totalorder %s894_s25, %s887_s7 }
  0x42   : > { %p891_p13 = pneg %p890_p10  ;;  %p897_p9 = por %p896_p7, %p895_p3 }
  0x44   : > { %p898_p2 = pnand %p897_p9, %p891_p13 }
  0x46   : > { %901 = shalt.err (!%p898_p2)
}
  0x47   : > { %s978_s20 = smov 128   ;;  %s979_s26 = smov 8  }
  0x48   : > { %769 = dma.hbm_to_vmem [thread:$0]  (!%p1103_p11), %s1101_s27, 512, %s1107_s22, %s1109_s28, %s978_s20, %s978_s20, %s979_s26  }
  0x49   : > { %p1241_p0 = scmp.ne.s32.totalorder %s1236_s17, 0 }
  0x4a   : > { %s1140_s19 = sand.u32 (!%p1241_p0), 1, %s964_s10   ;;  %p1242_p5 = scmp.ne.s32.totalorder (!%p1241_p0), %s1234_s15, 0 }
  0x4b   : > { %147 = sbr.rel (%p1241_p0) target bundleno = 1089 (0x441), region = 28  ;;  %s685_s29 = sshll.u32 (!%p1241_p0), %s1140_s19, 5 }
  0x4c   : > { %s150_s30 = scalar_lea.sflag (!%p1241_p0), [#allocation3], %s1140_s19  ;;  %s153_s3 = scalar_lea.vmem (!%p1241_p0), [#allocation2], %s685_s29 }
  0x52   : > { %947 = dma.done.wait (%p1242_p5), %s150_s30, 512  }
  0x53   : > { %949 = vsyncadd (%p1242_p5), %s150_s30, 4294966784  ;;  %p1243_p11 = scmp.eq.s32.totalorder %s1022_s13, 0 }
  0x55   : > { %951 = dma.done.wait (%p1243_p11), [#allocation6], 768   ;;  %p1244_p1 = pmov %p1243_p11 }
  0x56   : > { %v980_v0 = vmov 0   ;;  %v820_v1 = vld [vmem:[#allocation5 + $0x4] ss:$12 sps:$4 sm:$0xff]   ;;  %v822_v2 = vld [vmem:[#allocation5] ss:$12 sps:$4 sm:$0xff]   ;;  %vm227_vm0 = vcmask 261120   ;;  %v422_v32 = vlaneseq }
  0x57   : > { %953 = vsyncadd (%p1244_p1), [#allocation6], 4294966528  ;;  %266 = vmatprep.mubr.bf16.mxu0 %v980_v0  ;;  %234 = vmatprep.subr.bf16.mxu0 %v820_v1  ;;  %v823_v3 = vld [vmem:[#allocation5 + $0x1c] ss:$12 sps:$4 sm:$0xff]   ;;  %v181_v4 = vld [vmem:[%s153_s3] sm:$0xff]  ;;  %v981_v13 = vmov 0.0  }
  0x58   : > { %235 = vmatpush1.bf16.msra.mxu0 %v822_v2  ;;  %v825_v5 = vld [vmem:[#allocation5 + $0x18] ss:$12 sps:$4 sm:$0xff]   ;;  %v182_v6 = vld [vmem:[%s153_s3 + $0x8] sm:$0xff]  ;;  %v183_v10 = vld [vmem:[%s153_s3 + $0x10] sm:$0xff]  ;;  %vm982_vm1 = vmmov 0   ;;  %v423_v33 = vshrl.u32 %v422_v32, 7 }
  0x59   : > { %236 = vmatprep.subr.bf16.mxu0 %v823_v3  ;;  %v193_v7 = vpack.c.bf16 %v182_v6, %v181_v4  ;;  %v826_v8 = vld [vmem:[#allocation5 + $0x8] ss:$12 sps:$4 sm:$0xff]   ;;  %v827_v9 = vld [vmem:[#allocation5 + $0x20] ss:$12 sps:$4 sm:$0xff]   ;;  %v184_v11 = vld [vmem:[%s153_s3 + $0x18] sm:$0xff]  ;;  %v426_v34 = vand.u32 127, %v422_v32 }
  0x5a   : > { %722 = vmatprep.subr.bf16.mxu1 %v826_v8  ;;  %v194_v12 = vpack.c.bf16 %v184_v11, %v183_v10  ;;  %v424_v35 = vadd.s32 8, %v423_v33  ;;  %vm437_vm3 = vcmask 130048   ;;  %s177_s15 = scalar_lea.vmem [#allocation7], %s685_s29  ;;  %s709_s27 = sshll.u32 %s1022_s13, 9 }
  0x5b   : > { %726 = vmatprep.mubr.msk.bf16.mxu1 %vm227_vm0, %v193_v7  ;;  %723 = vmatpush3.bf16.msra.mxu1 %v826_v8  ;;  %vm427_vm2 = vcmp.ge.s32.totalorder %v423_v33, %v426_v34  ;;  %s593_s17 = sshll.u32 %s177_s15, 4  ;;  %s1182_s28 = scalar_lea.hbm %s1230_s2, %s709_s27  ;;  %s1177_s17 = int_to_ptr.vmem [resolvable:$true] %s593_s17 }
  0x5c   : > { %237 = vmatpush1.bf16.msra.mxu0 %v825_v5  ;;  %724 = vmatprep.subr.bf16.mxu1 %v827_v9  ;;  %vm428_vm4 = vcmp.ge.s32.totalorder %v424_v35, %v426_v34  ;;  %s579_s4 = scalar_lea.sflag [#allocation4], %s1140_s19  ;;  %s902_s13 = scalar_lea.vmem %s1177_s17, 512 }
  0x5d   : > { %736 = vmatprep.subr.bf16.mxu0 %v981_v13  ;;  %p903_p4 = scmp.ne.s32.totalorder %s1177_s17, %s902_s13  ;;  %s983_s5 = smov [#allocation7]  }
  0x5e   : > { %s906_s6 = sshll.u32 %s983_s5, 4  ;;  %s907_s6 = int_to_ptr.vmem [resolvable:$false] %s906_s6 }
  0x5f   : > { %694 = vmatmul.mubr.msk.bf16.vlgmr.msra.gmra.mrb[0].mxu0 %vm227_vm0, %v193_v7  ;;  %725 = vmatpush3.bf16.msra.mxu1 %v827_v9  ;;  %p904_p6 = pnand %p903_p4, %p1092_p12  ;;  %s908_s7 = scalar_lea.vmem %s907_s6, 1024 }
  0x60   : > { %276 = vmatprep.mubr.bf16.mxu0 %v980_v0  ;;  %730 = vmatprep.subr.bf16.mxu1 %v981_v13  ;;  %p909_p10 = scmp.lt.s32.totalorder %s1177_s17, %s907_s6  ;;  %p910_p13 = scmp.lt.s32.totalorder %s908_s7, %s902_s13 }
  0x61   : > { %p905_p8 = pneg %p904_p6 }
  0x62   : > { %727 = vmatmul.mubr.msk.bf16.vlgmr.msra.gmra.mrb[0].mxu1 %vm227_vm0, %v194_v12  ;;  %p911_p3 = por %p910_p13, %p909_p10 }
  0x63   : > { %732 = vmatprep.mubr.msk.bf16.mxu1 %vm982_vm1, %v981_v13 }
  0x64   : > { %p912_p7 = pnand %p911_p3, %p905_p8 }
  0x67   : > { %695 = vmatmul.mubr.msk.bf16.gmra.mrb[4].mxu0 %vm227_vm0, %v194_v12 }
  0x68   : > { %738 = vmatprep.mubr.msk.bf16.mxu0 %vm982_vm1, %v981_v13 }
 0x132   : > { %v268_v14 = vpop.f32.mrb[0].mxu0 }
 0x133   : > { %v270_v15 = vpop.f32.mrb[1].mxu0 }
 0x134   : > { %v272_v16 = vpop.f32.mrb[2].mxu0 }
 0x135   : > { %v336_v17 = vpack.c.bf16 %v272_v16, %v268_v14  ;;  %v274_v18 = vpop.f32.mrb[3].mxu0  ;;  %v728_v20 = vpop.f32.mrb[0].mxu1 }
 0x136   : > { %v338_v19 = vpack.c.bf16 %v274_v18, %v270_v15  ;;  %v321_v21 = vpop.f32.mrb[1].mxu1 }
 0x137   : > { %v729_v22 = vpop.f32.mrb[2].mxu1 }
 0x138   : > { %731 = vmatpush3.bf16.xpose.msra.mxu1 %v338_v19  ;;  %v485_v23 = vpack.c.bf16 %v729_v22, %v728_v20  ;;  %v324_v24 = vpop.f32.mrb[3].mxu1 }
 0x139   : > { %742 = vmatprep.subr.bf16.mxu1 %v981_v13  ;;  %v484_v26 = vpack.c.bf16 %v324_v24, %v321_v21 }
 0x13a   : > { %v278_v25 = vpop.f32.mrb[4].mxu0 }
 0x13b   : > { %v280_v27 = vpop.f32.mrb[5].mxu0 }
 0x13c   : > { %v282_v28 = vpop.f32.mrb[6].mxu0 }
 0x13d   : > { %v337_v29 = vpack.c.bf16 %v282_v28, %v278_v25  ;;  %v284_v30 = vpop.f32.mrb[7].mxu0 }
 0x13e   : > { %v339_v31 = vpack.c.bf16 %v284_v30, %v280_v27 }
 0x13f   : > { %733 = vmatmul.mubr.bf16.vlgmr.msra.gmra.mrb[4].mxu1 %v336_v17 }
 0x140   : > { %737 = vmatpush3.bf16.xpose.msra.mxu0 %v339_v31  ;;  %743 = vmatpush3.bf16.msra.mxu1 %v484_v26 }
 0x141   : > { %748 = vmatprep.subr.bf16.mxu0 %v981_v13  ;;  %744 = vmatprep.mubr.msk.bf16.mxu1 %vm982_vm1, %v981_v13 }
 0x147   : > { %739 = vmatmul.mubr.bf16.vlgmr.msra.gmra.mrb[8].mxu0 %v337_v29 }
 0x148   : > { %749 = vmatpush3.bf16.msra.mxu0 %v485_v23  ;;  %750 = vmatprep.mubr.msk.bf16.mxu0 %vm982_vm1, %v981_v13 }
 0x212   : > { %v374_v36 = vpop.f32.mrb[4].mxu1 }
 0x213   : > { %v433_v37 = vsel %vm427_vm2, %v374_v36, -3.4028235e+38  ;;  %v734_v38 = vpop.f32.mrb[5].mxu1 }
 0x214   : > { %v377_v39 = vpop.f32.mrb[6].mxu1  ;;  %v438_v40 = vsel %vm437_vm3, %v433_v37, -inf }
 0x215   : > { %v434_v41 = vsel %vm428_vm4, %v377_v39, -3.4028235e+38  ;;  %439 = vmax.xlane.f32.xlu0 %v438_v40  ;;  %v735_v42 = vpop.f32.mrb[7].mxu1 }
 0x216   : > { %v441_v43 = vsel %vm437_vm3, %v434_v41, -inf }
 0x219   : > { %442 = vmax.xlane.f32.xlu0 %v441_v43 }
 0x21a   : > { %v415_v44 = vpop.f32.mrb[8].mxu0 }
 0x21b   : > { %v435_v45 = vsel %vm427_vm2, %v415_v44, -3.4028235e+38  ;;  %v740_v46 = vpop.f32.mrb[9].mxu0 }
 0x21c   : > { %v418_v47 = vpop.f32.mrb[10].mxu0  ;;  %v444_v48 = vsel %vm437_vm3, %v435_v45, -inf }
 0x21d   : > { %v436_v49 = vsel %vm428_vm4, %v418_v47, -3.4028235e+38  ;;  %445 = vmax.xlane.f32.xlu1 %v444_v48  ;;  %v741_v50 = vpop.f32.mrb[11].mxu0 }
 0x21e   : > { %v447_v51 = vsel %vm437_vm3, %v436_v49, -inf }
 0x221   : > { %448 = vmax.xlane.f32.xlu1 %v447_v51 }
 0x2a2   : > { %v440_v52 = vpop.xlane.xlu0 %439 }
 0x2a3   : > { %v450_v53 = vsub.f32 %v433_v37, %v440_v52 }
 0x2a5   : > { %v454_v54 = vmul.f32 1.442695, %v450_v53 }
 0x2a6   : > { %v443_v55 = vpop.xlane.xlu0 %442 }
 0x2a7   : > { %828 = vpow2.f32 %v454_v54  ;;  %v451_v56 = vsub.f32 %v434_v41, %v443_v55 }
 0x2a9   : > { %v456_v57 = vmul.f32 1.442695, %v451_v56 }
 0x2aa   : > { %v446_v58 = vpop.xlane.xlu1 %445 }
 0x2ab   : > { %830 = vpow2.f32 %v456_v57  ;;  %v452_v59 = vsub.f32 %v435_v45, %v446_v58 }
 0x2ad   : > { %v458_v60 = vmul.f32 1.442695, %v452_v59 }
 0x2ae   : > { %v449_v61 = vpop.xlane.xlu1 %448 }
 0x2af   : > { %832 = vpow2.f32 %v458_v60  ;;  %v453_v62 = vsub.f32 %v436_v49, %v449_v61 }
 0x2b1   : > { %v829_v63 = vpop.eup %828  ;;  %v460_v0 = vmul.f32 1.442695, %v453_v62 }
 0x2b2   : > { %v462_v1 = vsel %vm437_vm3, %v829_v63, 0.0 }
 0x2b3   : > { %834 = vpow2.f32 %v460_v0  ;;  %463 = vadd.xlane.f32.xlu0 %v462_v1 }
 0x2b5   : > { %v831_v2 = vpop.eup %830 }
 0x2b6   : > { %v465_v3 = vsel %vm437_vm3, %v831_v2, 0.0 }
 0x2b7   : > { %466 = vadd.xlane.f32.xlu1 %v465_v3 }
 0x2b9   : > { %v833_v4 = vpop.eup %832 }
 0x2ba   : > { %v468_v5 = vsel %vm437_vm3, %v833_v4, 0.0 }
 0x2bb   : > { %469 = vadd.xlane.f32.xlu0 %v468_v5 }
 0x2bd   : > { %v835_v6 = vpop.eup %834 }
 0x2be   : > { %v471_v7 = vsel %vm437_vm3, %v835_v6, 0.0 }
 0x2bf   : > { %472 = vadd.xlane.f32.xlu1 %v471_v7 }
 0x340   : > { %v464_v8 = vpop.xlane.xlu0 %463 }
 0x341   : > { %836 = vrcp.f32 %v464_v8 }
 0x344   : > { %v467_v9 = vpop.xlane.xlu1 %466 }
 0x345   : > { %838 = vrcp.f32 %v467_v9 }
 0x348   : > { %v470_v10 = vpop.xlane.xlu0 %469 }
 0x349   : > { %840 = vrcp.f32 %v470_v10 }
 0x34b   : > { %v837_v12 = vpop.eup %836 }
 0x34c   : > { %v473_v11 = vpop.xlane.xlu1 %472  ;;  %v478_v14 = vmul.f32 %v837_v12, %v829_v63 }
 0x34d   : > { %842 = vrcp.f32 %v473_v11 }
 0x34f   : > { %v839_v13 = vpop.eup %838 }
 0x350   : > { %v479_v15 = vmul.f32 %v839_v13, %v831_v2 }
 0x352   : > { %v482_v16 = vpack.c.bf16 %v479_v15, %v478_v14 }
 0x353   : > { %v841_v17 = vpop.eup %840 }
 0x354   : > { %745 = vmatmul.mubr.msk.bf16.vlgmr.msra.gmra.mrb[8].mxu1 %vm437_vm3, %v482_v16  ;;  %v480_v19 = vmul.f32 %v841_v17, %v833_v4 }
 0x357   : > { %v843_v18 = vpop.eup %842 }
 0x358   : > { %v481_v20 = vmul.f32 %v843_v18, %v835_v6 }
 0x35a   : > { %v483_v21 = vpack.c.bf16 %v481_v20, %v480_v19 }
 0x35c   : > { %751 = vmatmul.mubr.msk.bf16.vlgmr.msra.gmra.mrb[12].mxu0 %vm437_vm3, %v483_v21 }
 0x427   : > { %v523_v22 = vpop.f32.mrb[8].mxu1 }
 0x428   : > { %574 = vst.msk [vmem:[%s177_s15] sm:$0xff] %vm437_vm3, %v523_v22  ;;  %v746_v23 = vpop.f32.mrb[9].mxu1 }
 0x429   : > { %v526_v24 = vpop.f32.mrb[10].mxu1 }
 0x42a   : > { %575 = vst.msk [vmem:[%s177_s15 + $0x8] sm:$0xff] %vm437_vm3, %v526_v24  ;;  %v747_v25 = vpop.f32.mrb[11].mxu1 }
 0x42f   : > { %v567_v26 = vpop.f32.mrb[12].mxu0 }
 0x430   : > { %576 = vst.msk [vmem:[%s177_s15 + $0x10] sm:$0xff] %vm437_vm3, %v567_v26  ;;  %v752_v27 = vpop.f32.mrb[13].mxu0 }
 0x431   : > { %v570_v28 = vpop.f32.mrb[14].mxu0 }
 0x432   : > { %577 = vst.msk [vmem:[%s177_s15 + $0x18] sm:$0xff] %vm437_vm3, %v570_v28  ;;  %v753_v29 = vpop.f32.mrb[15].mxu0 }
 0x433   : > { %915 = shalt.err (!%p912_p7)
}
 0x434   : > { %s916_s18 = scalar_lea.hbm %s1182_s28, 512  ;;  %s920_s20 = scalar_lea.hbm %s1230_s2, 1024 }
 0x435   : > { %p917_p9 = scmp.ne.s32.totalorder %s1182_s28, %s916_s18  ;;  %p921_p5 = scmp.lt.u32.totalorder %s1182_s28, %s1230_s2 }
 0x436   : > { %p922_p11 = scmp.lt.u32.totalorder %s920_s20, %s916_s18  ;;  %p924_p4 = scmp.lt.u32.totalorder %s916_s18, %s1182_s28 }
 0x437   : > { %p918_p2 = pnand %p917_p9, %p1092_p12 }
 0x438   : > { %p923_p1 = por %p922_p11, %p921_p5 }
 0x439   : > { %p919_p0 = pneg %p918_p2 }
 0x43a   : > { %p925_p6 = por %p924_p4, %p923_p1 }
 0x43c   : > { %p926_p8 = pnand %p925_p6, %p919_p0 }
 0x43e   : > { %929 = shalt.err (!%p926_p8)
}
 0x43f   : > { %s984_s30 = smov 128   ;;  %s985_s3 = smov 8  }
 0x440   : > { %760 = dma.vmem_to_hbm [thread:$0]  (%p1092_p12), %s1177_s17, 512, %s1182_s28, %s579_s4, %s984_s30, %s984_s30, %s985_s3  }
 0x441 PF: > { %s608_s15 = sand.u32 1, %s960_s9   ;;  %p1245_p10 = scmp.ne.s32.totalorder %s1235_s16, 0 }
 0x442   : > { %p1246_p13 = scmp.ge.s32.totalorder %s972_s12, 2  ;;  %s609_s27 = scalar_lea.sflag [#allocation4], %s608_s15 }
 0x444   : > { %p771_p3 = pnand %p1246_p13, %p1245_p10 }
 0x446   : > { %955 = dma.done.wait (!%p771_p3), %s609_s27, 512  }
 0x447   : > { %957 = vsyncadd (!%p771_p3), %s609_s27, 4294966784  ;;  %p16_p7 = scmp.ge.s32.totalorder %s1057_s21, 4   ;;  %s1247_s9 = smov %s964_s10 }
 0x448   : > { %s1248_s10 = smov %s968_s11  ;;  %s1249_s11 = smov %s1088_s8 }
 0x449   : > { %s1250_s12 = smov %s1057_s21  ;;  %18 = sbr.rel (!%p16_p7) target bundleno = 6 (0x6), region = 77 }
 0x450   :  { %614 = vsyncpa [#allocation3], 1 }
 0x451   :  { %616 = vsyncpa [#allocation3 + $0x1], 1 }
 0x452   :  { %617 = vsyncpa [#allocation6], 1 }
 0x453   :  { %618 = vsyncpa [#allocation4], 1 }
 0x454   :  { %620 = vsyncpa [#allocation4 + $0x1], 1 }

</bundles_post_ra>
